<compile_context>
chip_gen: v5e
topology: v5e:2x2
jax: 0.10.0
libtpu: 0.0.40
codegen_flags: <defaults>
</compile_context>

<pallas_src>
import math
import numpy as np

import jax
import jax.numpy as jnp
from jax import lax
from jax.experimental import pallas as pl
from jax.experimental.pallas import tpu as pltpu


# ---------------------------------------------------------------------------
# Fused FFN kernel: o = relu(x @ W1.T + b1) @ W2.T + b2
# ---------------------------------------------------------------------------

def _ffn_kernel(x_ref, w1_ref, b1_ref, w2_ref, b2_ref, o_ref):
    x = x_ref[...]                                   # (tm, d_in)

    # hidden = x @ W1.T + b1   (W1: (d_hid, d_in); contract x dim 1 with W1 dim 1)
    h = lax.dot_general(
        x, w1_ref[...],
        dimension_numbers=(((1,), (1,)), ((), ())),
        preferred_element_type=jnp.float32,
    )
    h = jnp.maximum(h + b1_ref[...], 0.0)            # ReLU, bias broadcast (1, d_hid)

    # out = h @ W2.T + b2      (W2: (d_out, d_hid))
    o = lax.dot_general(
        h, w2_ref[...],
        dimension_numbers=(((1,), (1,)), ((), ())),
        preferred_element_type=jnp.float32,
    )
    o_ref[...] = o + b2_ref[...]                     # bias broadcast (1, d_out)


def position_wise_ffn(x, w1, b1, w2, b2, *, tile_m=None):
    """x: (..., d_in) float32.  w1: (d_hid, d_in), b1: (d_hid,),
    w2: (d_out, d_hid), b2: (d_out,).  Returns (..., d_out) float32."""
    orig_shape = x.shape
    d_in = orig_shape[-1]
    d_hid = w1.shape[0]
    d_out = w2.shape[0]

    x2d = x.reshape(-1, d_in).astype(jnp.float32)
    M = x2d.shape[0]

    # Pick a row tile: whole M for tiny inputs, else a multiple of 8 that divides M.
    if tile_m is None:
        tile_m = M if M <= 256 else 256
    while M % tile_m != 0:
        tile_m //= 2
    tile_m = max(tile_m, 1)
    grid_m = M // tile_m

    b1_2d = b1.reshape(1, d_hid).astype(jnp.float32)
    b2_2d = b2.reshape(1, d_out).astype(jnp.float32)

    out2d = pl.pallas_call(
        _ffn_kernel,
        out_shape=jax.ShapeDtypeStruct((M, d_out), jnp.float32),
        grid=(grid_m,),
        in_specs=[
            pl.BlockSpec((tile_m, d_in), lambda i: (i, 0)),   # x rows, tiled
            pl.BlockSpec((d_hid, d_in), lambda i: (0, 0)),    # W1, VMEM-resident
            pl.BlockSpec((1, d_hid), lambda i: (0, 0)),       # b1
            pl.BlockSpec((d_out, d_hid), lambda i: (0, 0)),   # W2, VMEM-resident
            pl.BlockSpec((1, d_out), lambda i: (0, 0)),       # b2
        ],
        out_specs=pl.BlockSpec((tile_m, d_out), lambda i: (i, 0)),
        compiler_params=pltpu.CompilerParams(
            dimension_semantics=("parallel",),
        ),
    )(x2d, w1.astype(jnp.float32), b1_2d, w2.astype(jnp.float32), b2_2d)

    return out2d.reshape(*orig_shape[:-1], d_out)


# ---------------------------------------------------------------------------
# Pure-numpy reference (direct translation of the PyTorch module)
# ---------------------------------------------------------------------------

def _ffn_ref(x, w1, b1, w2, b2):
    x = np.asarray(x, np.float32)
    h = x @ np.asarray(w1, np.float32).T + np.asarray(b1, np.float32)
    h = np.maximum(h, 0.0)
    return h @ np.asarray(w2, np.float32).T + np.asarray(b2, np.float32)


# ---------------------------------------------------------------------------
# main
# ---------------------------------------------------------------------------

if __name__ == "__main__":
    # Small shapes consistent with the module: (batch, seq, ffn_num_input)
    batch, seq = 2, 8
    ffn_num_input, ffn_num_hiddens, ffn_num_outputs = 32, 64, 32

    key = jax.random.PRNGKey(0)
    k_x, k_w1, k_b1, k_w2, k_b2 = jax.random.split(key, 5)

    x = jax.random.normal(k_x, (batch, seq, ffn_num_input), jnp.float32)

    s1 = 1.0 / math.sqrt(ffn_num_input)
    s2 = 1.0 / math.sqrt(ffn_num_hiddens)
    W1 = s1 * jax.random.normal(k_w1, (ffn_num_hiddens, ffn_num_input), jnp.float32)
    b1 = s1 * jax.random.normal(k_b1, (ffn_num_hiddens,), jnp.float32)
    W2 = s2 * jax.random.normal(k_w2, (ffn_num_outputs, ffn_num_hiddens), jnp.float32)
    b2 = s2 * jax.random.normal(k_b2, (ffn_num_outputs,), jnp.float32)

    out = position_wise_ffn(x, W1, b1, W2, b2)
    out = jax.block_until_ready(out)

    ref = _ffn_ref(np.asarray(x), np.asarray(W1), np.asarray(b1),
                   np.asarray(W2), np.asarray(b2))

    # Default MXU precision (bf16 passes, f32 accumulate) -> ~1e-3 relative error.
    np.testing.assert_allclose(np.asarray(out), ref, rtol=2e-2, atol=2e-2)
    print("KERNEL_OK")
</pallas_src>

<mosaic_0001>
module attributes {stable_mosaic.version = 11 : i64} {
  func.func @_ffn_kernel(%arg0: i32, %arg1: memref<16x32xf32, #tpu.memory_space<vmem>>, %arg2: memref<64x32xf32, #tpu.memory_space<vmem>>, %arg3: memref<1x64xf32, #tpu.memory_space<vmem>>, %arg4: memref<32x64xf32, #tpu.memory_space<vmem>>, %arg5: memref<1x32xf32, #tpu.memory_space<vmem>>, %arg6: memref<16x32xf32, #tpu.memory_space<vmem>>) attributes {dimension_semantics = [#tpu.dimension_semantics<parallel>], iteration_bounds = array<i64: 1>, scalar_prefetch = 0 : i64, scratch_operands = 0 : i64, tpu.core_type = #tpu.core_type<tc>, window_params = [{transform_indices = @transform_0, window_bounds = array<i64: 16, 32>}, {pipeline_mode = #tpu.pipeline_mode<synchronous>, transform_indices = @transform_1, window_bounds = array<i64: 64, 32>}, {pipeline_mode = #tpu.pipeline_mode<synchronous>, transform_indices = @transform_2, window_bounds = array<i64: 1, 64>}, {pipeline_mode = #tpu.pipeline_mode<synchronous>, transform_indices = @transform_3, window_bounds = array<i64: 32, 64>}, {pipeline_mode = #tpu.pipeline_mode<synchronous>, transform_indices = @transform_4, window_bounds = array<i64: 1, 32>}, {transform_indices = @transform_5, window_bounds = array<i64: 16, 32>}]} {
    %c0 = arith.constant 0 : index
    %c0_0 = arith.constant 0 : index
    %0 = vector.load %arg1[%c0, %c0_0] : memref<16x32xf32, #tpu.memory_space<vmem>>, vector<16x32xf32>
    %c0_1 = arith.constant 0 : index
    %c0_2 = arith.constant 0 : index
    %1 = vector.load %arg2[%c0_1, %c0_2] : memref<64x32xf32, #tpu.memory_space<vmem>>, vector<64x32xf32>
    %cst = arith.constant dense<0.000000e+00> : vector<16x64xf32>
    %2 = tpu.matmul %0, %1, %cst {dimension_numbers = #tpu.dot_dimension_numbers<[1], [1], [0], [0], [0, 0, 1, 0], [], []>} : vector<16x32xf32>, vector<64x32xf32>, vector<16x64xf32> -> vector<16x64xf32>
    %c0_3 = arith.constant 0 : index
    %c0_4 = arith.constant 0 : index
    %3 = vector.load %arg3[%c0_3, %c0_4] : memref<1x64xf32, #tpu.memory_space<vmem>>, vector<1x64xf32>
    %4 = vector.broadcast %3 : vector<1x64xf32> to vector<16x64xf32>
    %5 = arith.addf %2, %4 : vector<16x64xf32>
    %cst_5 = arith.constant 0.000000e+00 : f32
    %6 = vector.broadcast %cst_5 : f32 to vector<16x64xf32>
    %7 = arith.maximumf %5, %6 : vector<16x64xf32>
    %c0_6 = arith.constant 0 : index
    %c0_7 = arith.constant 0 : index
    %8 = vector.load %arg4[%c0_6, %c0_7] : memref<32x64xf32, #tpu.memory_space<vmem>>, vector<32x64xf32>
    %cst_8 = arith.constant dense<0.000000e+00> : vector<16x32xf32>
    %9 = tpu.matmul %7, %8, %cst_8 {dimension_numbers = #tpu.dot_dimension_numbers<[1], [1], [0], [0], [0, 0, 1, 0], [], []>} : vector<16x64xf32>, vector<32x64xf32>, vector<16x32xf32> -> vector<16x32xf32>
    %c0_9 = arith.constant 0 : index
    %c0_10 = arith.constant 0 : index
    %10 = vector.load %arg5[%c0_9, %c0_10] : memref<1x32xf32, #tpu.memory_space<vmem>>, vector<1x32xf32>
    %11 = vector.broadcast %10 : vector<1x32xf32> to vector<16x32xf32>
    %12 = arith.addf %9, %11 : vector<16x32xf32>
    %c0_11 = arith.constant 0 : index
    %c0_12 = arith.constant 0 : index
    %13 = vector.load %arg6[%c0_11, %c0_12] : memref<16x32xf32, #tpu.memory_space<vmem>>, vector<16x32xf32>
    tpu.vector_store %arg6[%c0_11, %c0_12], %12 {strides = array<i32>} : memref<16x32xf32, #tpu.memory_space<vmem>>, vector<16x32xf32>,
    return
  }
  func.func @transform_0(%arg0: i32) -> (i32, i32) {
    %c0_i32 = arith.constant 0 : i32
    %c0_i32_0 = arith.constant 0 : i32
    return %arg0, %c0_i32 : i32, i32
  }
  func.func @transform_1(%arg0: i32) -> (i32, i32) {
    %c0_i32 = arith.constant 0 : i32
    %c0_i32_0 = arith.constant 0 : i32
    %c0_i32_1 = arith.constant 0 : i32
    return %c0_i32, %c0_i32_0 : i32, i32
  }
  func.func @transform_2(%arg0: i32) -> (i32, i32) {
    %c0_i32 = arith.constant 0 : i32
    %c0_i32_0 = arith.constant 0 : i32
    %c0_i32_1 = arith.constant 0 : i32
    return %c0_i32, %c0_i32_0 : i32, i32
  }
  func.func @transform_3(%arg0: i32) -> (i32, i32) {
    %c0_i32 = arith.constant 0 : i32
    %c0_i32_0 = arith.constant 0 : i32
    %c0_i32_1 = arith.constant 0 : i32
    return %c0_i32, %c0_i32_0 : i32, i32
  }
  func.func @transform_4(%arg0: i32) -> (i32, i32) {
    %c0_i32 = arith.constant 0 : i32
    %c0_i32_0 = arith.constant 0 : i32
    %c0_i32_1 = arith.constant 0 : i32
    return %c0_i32, %c0_i32_0 : i32, i32
  }
  func.func @transform_5(%arg0: i32) -> (i32, i32) {
    %c0_i32 = arith.constant 0 : i32
    %c0_i32_0 = arith.constant 0 : i32
    return %arg0, %c0_i32 : i32, i32
  }
}

</mosaic_0001>

<bundles_post_ra>
// kernel: tpu_custom_call.1
= control target key start
LH: loop header
LB: loop body
LE: loop exit
PB: predicated region body
PF: predicated region fallthrough
CT: control target
= control target key end

     0   :  { %vm35_vm0 = vcmask 261120   ;;  %vm99_vm1 = vcmask 523264   ;;  %s326_s0 = inlined_call_operand.vmem [shape: f32[16,32], index: 0, kind: input, shape index: {}]   ;;  %s327_s1 = inlined_call_operand.vmem [shape: f32[64,32], index: 1, kind: input, shape index: {}]   ;;  %s328_s2 = inlined_call_operand.vmem [shape: f32[1,64], index: 2, kind: input, shape index: {}]   ;;  %s329_s3 = inlined_call_operand.vmem [shape: f32[32,64], index: 3, kind: input, shape index: {}]   ;;  %s330_s4 = inlined_call_operand.vmem [shape: f32[1,32], index: 4, kind: input, shape index: {}]   ;;  %s331_s5 = inlined_call_operand.hbm [shape: f32[16,32], index: 5, kind: output, shape index: {}]  }
   0x1   :  { %v30_v0 = vld [vmem:[%s327_s1 + $0x38] sm:$0xff]  ;;  %v29_v1 = vld [vmem:[%s327_s1 + $0x30] sm:$0xff] }
   0x2   :  { %161 = vmatpush.xpose.msk.msra.mxu0 %vm35_vm0, %v30_v0  ;;  %177 = vmatpush.xpose.msk.msra.mxu2 %vm35_vm0, %v30_v0  ;;  %v94_v2 = vld [vmem:[%s329_s3 + $0x18] sm:$0xff]  ;;  %v93_v3 = vld [vmem:[%s329_s3 + $0x10] sm:$0xff] }
   0x3   :  { %171 = vmatpush.xpose.msk.msra.mxu1 %vm99_vm1, %v94_v2 }
   0x6   :  { %162 = vmatpush.xpose.msk.msra.mxu0 %vm35_vm0, %v29_v1  ;;  %178 = vmatpush.xpose.msk.msra.mxu2 %vm35_vm0, %v29_v1 }
   0x7   :  { %10 = vsyncpa [#allocation3], 0  ;;  %v28_v4 = vld [vmem:[%s327_s1 + $0x28] sm:$0xff]  ;;  %172 = vmatpush.xpose.msk.msra.mxu1 %vm99_vm1, %v93_v3  ;;  %v27_v6 = vld [vmem:[%s327_s1 + $0x20] sm:$0xff]  ;;  %s149_s25 = sshll.u32 %s331_s5, 4  ;;  %s217_s26 = smov 128   ;;  %s150_s25 = int_to_ptr.hbm [resolvable:$true] %s149_s25 }
   0x8   :  { %v92_v5 = vld [vmem:[%s329_s3 + $0x8] sm:$0xff]  ;;  %v26_v7 = vld [vmem:[%s327_s1 + $0x18] sm:$0xff]  ;;  %v25_v8 = vld [vmem:[%s327_s1 + $0x10] sm:$0xff]  ;;  %s218_s27 = smov 8  }
   0x9   :  { %v24_v9 = vld [vmem:[%s327_s1 + $0x8] sm:$0xff]  ;;  %v23_v10 = vld [vmem:[%s327_s1] sm:$0xff] }
   0xa   :  { %163 = vmatpush.xpose.msk.msra.mxu0 %vm35_vm0, %v28_v4  ;;  %179 = vmatpush.xpose.msk.msra.mxu2 %vm35_vm0, %v28_v4  ;;  %v21_v11 = vld [vmem:[%s326_s0] sm:$0xff]  ;;  %v22_v12 = vld [vmem:[%s326_s0 + $0x8] sm:$0xff] }
   0xb   :  { %173 = vmatpush.xpose.msk.msra.mxu1 %vm99_vm1, %v92_v5  ;;  %v91_v13 = vld [vmem:[%s329_s3] sm:$0xff]  ;;  %s216_s3 = smov [#allocation2]  }
   0xc   :  { %v188_v14 = vld [vmem:[%s328_s2] ss:$0 sm:$0xff]  ;;  %s147_s2 = sshll.u32 %s216_s3, 4  ;;  %s148_s2 = int_to_ptr.vmem [resolvable:$true] %s147_s2 }
   0xd   :  { %v189_v21 = vld [vmem:[%s330_s4] ss:$0 sm:$0xff] }
   0xe   :  { %164 = vmatpush.xpose.msk.msra.mxu0 %vm35_vm0, %v27_v6  ;;  %180 = vmatpush.xpose.msk.msra.mxu2 %vm35_vm0, %v27_v6 }
   0xf   :  { %174 = vmatpush.xpose.msk.msra.mxu1 %vm99_vm1, %v91_v13 }
  0x12   :  { %165 = vmatpush.xpose.msk.msra.mxu0 %vm35_vm0, %v26_v7  ;;  %181 = vmatpush.xpose.msk.msra.mxu2 %vm35_vm0, %v26_v7 }
  0x16   :  { %166 = vmatpush.xpose.msk.msra.mxu0 %vm35_vm0, %v25_v8  ;;  %182 = vmatpush.xpose.msk.msra.mxu2 %vm35_vm0, %v25_v8 }
  0x1a   :  { %167 = vmatpush.xpose.msk.msra.mxu0 %vm35_vm0, %v24_v9  ;;  %183 = vmatpush.xpose.msk.msra.mxu2 %vm35_vm0, %v24_v9 }
  0x1e   :  { %168 = vmatpush.xpose.msk.msra.mxu0 %vm35_vm0, %v23_v10  ;;  %184 = vmatpush.xpose.msk.msra.mxu2 %vm35_vm0, %v23_v10 }
  0x21   :  { %169 = vmatmul.msk.f32.vlgmr.msra.gmra.mxu0 %vm35_vm0, %v21_v11  ;;  %170 = vmatmul.msk.f32.vlgmr.msra.gmra.mxu2 %vm35_vm0, %v22_v12 }
  0x9e   :  { %v83_v15 = vpop.f32.mrf.mxu0 }
  0x9f   :  { %v84_v16 = vadd.f32 %v188_v14, %v83_v15 }
  0xa1   :  { %v89_v17 = vmax.f32 %v84_v16, 0.0 }
  0xa3   :  { %175 = vmatmul.msk.f32.vlgmr.msra.gmra.mxu1 %vm99_vm1, %v89_v17 }
  0xa4   :  { %v86_v18 = vpop.f32.mrf.mxu2 }
  0xa5   :  { %v87_v19 = vadd.f32 %v188_v14, %v86_v18 }
  0xa7   :  { %v90_v20 = vmax.f32 %v87_v19, 0.0 }
  0xab   :  { %176 = vmatmul.msk.f32.gmra.mxu1 %vm99_vm1, %v90_v20 }
 0x120   :  { %v135_v22 = vpop.f32.mrf.mxu1 }
 0x121   :  { %v136_v23 = vadd.f32 %v189_v21, %v135_v22 }
 0x123   :  { %141 = vst.msk [vmem:[#allocation2] sm:$0xff] %vm35_vm0, %v136_v23 }
 0x128   :  { %v138_v24 = vpop.f32.mrf.mxu1 }
 0x129   :  { %v139_v25 = vadd.f32 %v189_v21, %v138_v24 }
 0x12b   :  { %142 = vst.msk [vmem:[#allocation2 + $0x8] sm:$0xff] %vm35_vm0, %v139_v25 }
 0x12c   :  { %155 = dma.vmem_to_hbm [thread:$0]  %s148_s2, 256, %s150_s25, [#allocation3], %s217_s26, %s217_s26, %s218_s27  }
 0x12d   :  { %214 = dma.done.wait [#allocation3], 256  }
 0x12e   :  { %215 = vsyncadd [#allocation3], 4294967040 }
 0x12f   :  { %160 = vsyncpa [#allocation3], 1 }

</bundles_post_ra>
